<compile_context>
chip_gen: v7x
topology: tpu7x:2x2x1
jax: 0.10.0
libtpu: 0.0.40
codegen_flags: <defaults>
</compile_context>

<pallas_src>
import functools

import jax
import jax.numpy as jnp
from jax import lax
from jax.experimental import pallas as pl
from jax.experimental.pallas import tpu as pltpu


def _round_up(x: int, m: int) -> int:
    return ((x + m - 1) // m) * m


def _focal_loss_kernel(logits_ref, targets_ref, out_ref, *,
                       alpha: float, gamma: float, label_smoothing: float,
                       n_total: int, tile_n: int):
    i = pl.program_id(0)

    logits = logits_ref[...].astype(jnp.float32)           # (TILE_N, C)
    targets = targets_ref[...]                             # (TILE_N, 1) int32
    tn, c = logits.shape

    # Row-wise numerically stable logsumexp (lane-axis reductions -> XLU; exp -> EUP).
    m = jnp.max(logits, axis=-1, keepdims=True)                        # (TILE_N, 1)
    lse = jnp.log(jnp.sum(jnp.exp(logits - m), axis=-1, keepdims=True))
    log_z = m + lse                                                    # logsumexp

    # logits[row, target[row]] via iota-compare + masked row sum (no gather on TPU).
    class_ids = lax.broadcasted_iota(jnp.int32, (tn, c), 1)
    is_target = class_ids == targets
    t_logit = jnp.sum(jnp.where(is_target, logits, 0.0), axis=-1, keepdims=True)
    s_logit = jnp.sum(logits, axis=-1, keepdims=True)

    # Label-smoothed CE without materializing log_probs / q:
    #   ce = -sum(q * log_p),  q = (1-ls)*onehot + ls/C
    #      = (1-ls)*(log_z - logits[t]) + (ls/C)*(C*log_z - sum(logits))
    ls = label_smoothing
    ce = (1.0 - ls) * (log_z - t_logit) + (ls / c) * (c * log_z - s_logit)

    pt = jnp.exp(-ce)
    one_minus_pt = jnp.maximum(1.0 - pt, 0.0)
    g = float(gamma)
    if g == int(g) and g >= 0.0:
        mod = jnp.ones_like(one_minus_pt)
        for _ in range(int(g)):                       # gamma=2 -> two VPU multiplies
            mod = mod * one_minus_pt
    else:
        mod = one_minus_pt ** gamma
    focal = alpha * mod * ce                                           # (TILE_N, 1)

    # Mask rows past the global N (ragged last tile reads unspecified padding;
    # select is safe even if those rows produced NaN/inf).
    row = i * tile_n + lax.broadcasted_iota(jnp.int32, (tn, 1), 0)
    focal = jnp.where(row < n_total, focal, 0.0)

    partial = jnp.sum(focal)
    # Lane-dense per-block partial (unmasked 128-lane store); wrapper picks lane 0.
    out_ref[...] = jnp.full((1, 128), partial, dtype=jnp.float32)


def focal_loss(logits, targets, *, alpha: float = 1.0, gamma: float = 2.0,
               reduction: str = "mean", label_smoothing: float = 0.0,
               max_tile_n: int = 1024):
    """logits: (N, C) float (f32 or bf16), targets: (N,) int class indices -> scalar f32."""
    n, c = logits.shape
    targets2d = targets.astype(jnp.int32).reshape(n, 1)

    itemsize = jnp.dtype(logits.dtype).itemsize
    # Conservative per-buffer logits budget so 2x double-buffered input tiles (plus
    # f32 temporaries) fit every generation's scoped VMEM (v5e 16 MiB default ...).
    per_buffer_budget = 6 * 1024 * 1024
    tile_n = (per_buffer_budget // (max(c, 1) * itemsize)) // 8 * 8
    tile_n = max(8, min(max_tile_n, tile_n))
    tile_n = min(tile_n, _round_up(n, 8))
    grid = pl.cdiv(n, tile_n)

    kernel = functools.partial(
        _focal_loss_kernel,
        alpha=float(alpha), gamma=float(gamma),
        label_smoothing=float(label_smoothing),
        n_total=n, tile_n=tile_n,
    )

    cost = pl.CostEstimate(
        flops=8 * n * c,
        transcendentals=n * c + 3 * n,        # exp over logits + exp/log per row
        bytes_accessed=n * c * itemsize + n * 4 + grid * 128 * 4,
    )

    partials = pl.pallas_call(
        kernel,
        out_shape=jax.ShapeDtypeStruct((1, grid * 128), jnp.float32),
        grid=(grid,),
        in_specs=[
            pl.BlockSpec((tile_n, c), lambda i: (i, 0)),     # logits tile
            pl.BlockSpec((tile_n, 1), lambda i: (i, 0)),     # targets column
        ],
        out_specs=pl.BlockSpec((1, 128), lambda i: (0, i)),  # per-block partial sum
        compiler_params=pltpu.CompilerParams(
            dimension_semantics=("parallel",),               # megacore-shardable on v7x
            vmem_limit_bytes=32 * 1024 * 1024,
        ),
        cost_estimate=cost,
    )(logits, targets2d)

    total = jnp.sum(partials.reshape(grid, 128)[:, 0])
    if reduction == "mean":
        total = total / n                                    # divide by *global* N
    return total


def _focal_loss_ref(logits, targets, *, alpha=1.0, gamma=2.0,
                    reduction="mean", label_smoothing=0.0):
    n, c = logits.shape
    logits = logits.astype(jnp.float32)
    log_probs = jax.nn.log_softmax(logits, axis=-1)
    one_hot = jax.nn.one_hot(targets, c, dtype=jnp.float32)
    q = (1.0 - label_smoothing) * one_hot + label_smoothing / c
    ce = -jnp.sum(q * log_probs, axis=-1)
    pt = jnp.exp(-ce)
    focal = alpha * (1.0 - pt) ** gamma * ce
    return jnp.mean(focal) if reduction == "mean" else jnp.sum(focal)


if __name__ == "__main__":
    key = jax.random.PRNGKey(0)
    k_logits, k_targets = jax.random.split(key)

    # Small shapes; N chosen so the small test tile exercises multiple grid steps
    # plus a ragged (masked) last tile: 200 = 3*64 + 8.
    N, C = 200, 32
    logits = jax.random.normal(k_logits, (N, C), dtype=jnp.float32)
    targets = jax.random.randint(k_targets, (N,), 0, C, dtype=jnp.int32)

    alpha, gamma, label_smoothing = 1.0, 2.0, 0.1

    ok = True
    for reduction in ("mean", "sum"):
        loss = focal_loss(logits, targets, alpha=alpha, gamma=gamma,
                          reduction=reduction, label_smoothing=label_smoothing,
                          max_tile_n=64)
        loss = jax.block_until_ready(loss)
        ref = _focal_loss_ref(logits, targets, alpha=alpha, gamma=gamma,
                              reduction=reduction, label_smoothing=label_smoothing)
        if not jnp.allclose(loss, ref, rtol=1e-5, atol=1e-5):
            ok = False
            print("MISMATCH", reduction, loss, ref)

    assert ok
    print("KERNEL_OK")
</pallas_src>

<mosaic_0001>
module attributes {stable_mosaic.version = 11 : i64} {
  func.func @_focal_loss_kernel(%arg0: i32, %arg1: memref<64x32xf32, #tpu.memory_space<vmem>>, %arg2: memref<64x1xi32, #tpu.memory_space<vmem>>, %arg3: memref<1x128xf32, #tpu.memory_space<vmem>>) attributes {dimension_semantics = [#tpu.dimension_semantics<parallel>], iteration_bounds = array<i64: 4>, scalar_prefetch = 0 : i64, scratch_operands = 0 : i64, tpu.core_type = #tpu.core_type<tc>, window_params = [{transform_indices = @transform_0, window_bounds = array<i64: 64, 32>}, {transform_indices = @transform_1, window_bounds = array<i64: 64, 1>}, {transform_indices = @transform_2, window_bounds = array<i64: 1, 128>}]} {
    %c0 = arith.constant 0 : index
    %c0_0 = arith.constant 0 : index
    %0 = vector.load %arg1[%c0, %c0_0] : memref<64x32xf32, #tpu.memory_space<vmem>>, vector<64x32xf32>
    %c0_1 = arith.constant 0 : index
    %c0_2 = arith.constant 0 : index
    %1 = vector.load %arg2[%c0_1, %c0_2] : memref<64x1xi32, #tpu.memory_space<vmem>>, vector<64x1xi32>
    %cst = arith.constant dense<0xFF800000> : vector<64xf32>
    %2 = vector.multi_reduction <maximumf>, %0, %cst [1] : vector<64x32xf32> to vector<64xf32>
    %3 = vector.shape_cast %2 : vector<64xf32> to vector<64x1xf32>
    %4 = vector.broadcast %3 : vector<64x1xf32> to vector<64x32xf32>
    %5 = arith.subf %0, %4 : vector<64x32xf32>
    %6 = math.exp %5 : vector<64x32xf32>
    %cst_3 = arith.constant dense<0.000000e+00> : vector<64xf32>
    %7 = vector.multi_reduction <add>, %6, %cst_3 [1] : vector<64x32xf32> to vector<64xf32>
    %8 = vector.shape_cast %7 : vector<64xf32> to vector<64x1xf32>
    %9 = math.log %8 : vector<64x1xf32>
    %10 = arith.addf %3, %9 : vector<64x1xf32>
    %11 = tpu.iota {dimensions = array<i32: 1>} : vector<64x32xi32>
    %12 = vector.broadcast %1 : vector<64x1xi32> to vector<64x32xi32>
    %13 = arith.cmpi eq, %11, %12 : vector<64x32xi32>
    %cst_4 = arith.constant 0.000000e+00 : f32
    %14 = vector.broadcast %cst_4 : f32 to vector<64x32xf32>
    %15 = arith.select %13, %0, %14 : vector<64x32xi1>, vector<64x32xf32>
    %cst_5 = arith.constant dense<0.000000e+00> : vector<64xf32>
    %16 = vector.multi_reduction <add>, %15, %cst_5 [1] : vector<64x32xf32> to vector<64xf32>
    %17 = vector.shape_cast %16 : vector<64xf32> to vector<64x1xf32>
    %cst_6 = arith.constant dense<0.000000e+00> : vector<64xf32>
    %18 = vector.multi_reduction <add>, %0, %cst_6 [1] : vector<64x32xf32> to vector<64xf32>
    %19 = vector.shape_cast %18 : vector<64xf32> to vector<64x1xf32>
    %20 = arith.subf %10, %17 : vector<64x1xf32>
    %cst_7 = arith.constant 0.899999976 : f32
    %21 = vector.broadcast %cst_7 : f32 to vector<64x1xf32>
    %22 = arith.mulf %21, %20 : vector<64x1xf32>
    %cst_8 = arith.constant 3.200000e+01 : f32
    %23 = vector.broadcast %cst_8 : f32 to vector<64x1xf32>
    %24 = arith.mulf %23, %10 : vector<64x1xf32>
    %25 = arith.subf %24, %19 : vector<64x1xf32>
    %cst_9 = arith.constant 3.125000e-03 : f32
    %26 = vector.broadcast %cst_9 : f32 to vector<64x1xf32>
    %27 = arith.mulf %26, %25 : vector<64x1xf32>
    %28 = arith.addf %22, %27 : vector<64x1xf32>
    %cst_10 = arith.constant 0.000000e+00 : f32
    %29 = vector.broadcast %cst_10 : f32 to vector<64x1xf32>
    %30 = arith.subf %29, %28 : vector<64x1xf32>
    %31 = math.exp %30 : vector<64x1xf32>
    %cst_11 = arith.constant 1.000000e+00 : f32
    %32 = vector.broadcast %cst_11 : f32 to vector<64x1xf32>
    %33 = arith.subf %32, %31 : vector<64x1xf32>
    %cst_12 = arith.constant 0.000000e+00 : f32
    %34 = vector.broadcast %cst_12 : f32 to vector<64x1xf32>
    %35 = arith.maximumf %33, %34 : vector<64x1xf32>
    %cst_13 = arith.constant 1.000000e+00 : f32
    %36 = vector.broadcast %cst_13 : f32 to vector<64x1xf32>
    %37 = arith.mulf %36, %35 : vector<64x1xf32>
    %38 = arith.mulf %37, %35 : vector<64x1xf32>
    %cst_14 = arith.constant 1.000000e+00 : f32
    %39 = vector.broadcast %cst_14 : f32 to vector<64x1xf32>
    %40 = arith.mulf %39, %38 : vector<64x1xf32>
    %41 = arith.mulf %40, %28 : vector<64x1xf32>
    %c64_i32 = arith.constant 64 : i32
    %42 = arith.muli %arg0, %c64_i32 : i32
    %43 = tpu.iota {dimensions = array<i32: 0>} : vector<64x1xi32>
    %44 = vector.broadcast %42 : i32 to vector<64x1xi32>
    %45 = arith.addi %44, %43 : vector<64x1xi32>
    %c200_i32 = arith.constant 200 : i32
    %46 = vector.broadcast %c200_i32 : i32 to vector<64x1xi32>
    %47 = arith.cmpi slt, %45, %46 : vector<64x1xi32>
    %cst_15 = arith.constant 0.000000e+00 : f32
    %48 = vector.broadcast %cst_15 : f32 to vector<64x1xf32>
    %49 = arith.select %47, %41, %48 : vector<64x1xi1>, vector<64x1xf32>
    %50 = vector.shape_cast %49 : vector<64x1xf32> to vector<1x64x1xf32>
    %cst_16 = arith.constant dense<0.000000e+00> : vector<1xf32>
    %51 = vector.multi_reduction <add>, %50, %cst_16 [1, 2] : vector<1x64x1xf32> to vector<1xf32>
    %52 = vector.shape_cast %51 : vector<1xf32> to vector<1x1x1xf32>
    %53 = vector.extract %52[0, 0, 0] : f32 from vector<1x1x1xf32>
    %54 = vector.broadcast %53 : f32 to vector<1x128xf32>
    %c0_17 = arith.constant 0 : index
    %c0_18 = arith.constant 0 : index
    %55 = vector.load %arg3[%c0_17, %c0_18] : memref<1x128xf32, #tpu.memory_space<vmem>>, vector<1x128xf32>
    tpu.vector_store %arg3[%c0_17, %c0_18], %54 {strides = array<i32>} : memref<1x128xf32, #tpu.memory_space<vmem>>, vector<1x128xf32>,
    return
  }
  func.func @transform_0(%arg0: i32) -> (i32, i32) {
    %c0_i32 = arith.constant 0 : i32
    %c0_i32_0 = arith.constant 0 : i32
    return %arg0, %c0_i32 : i32, i32
  }
  func.func @transform_1(%arg0: i32) -> (i32, i32) {
    %c0_i32 = arith.constant 0 : i32
    %c0_i32_0 = arith.constant 0 : i32
    return %arg0, %c0_i32 : i32, i32
  }
  func.func @transform_2(%arg0: i32) -> (i32, i32) {
    %c0_i32 = arith.constant 0 : i32
    %c0_i32_0 = arith.constant 0 : i32
    return %c0_i32, %arg0 : i32, i32
  }
}

</mosaic_0001>

<bundles_post_ra>
// kernel: tpu_custom_call.1
= control target key start
LH: loop header
LB: loop body
LE: loop exit
PB: predicated region body
PF: predicated region fallthrough
CT: control target
= control target key end

     0   :  { %7 = vsyncpa [#allocation3], 0  ;;  %s1130_s0 = inlined_call_operand.vmem [shape: f32[200,32], index: 0, kind: input, shape index: {}]   ;;  %s1131_s1 = inlined_call_operand.vmem [shape: s32[200,1], index: 1, kind: input, shape index: {}]   ;;  %s1132_s2 = inlined_call_operand.hbm [shape: f32[1,512], index: 2, kind: output, shape index: {}]  }
   0x1   :  { %9 = vsyncpa [#allocation3 + $0x1], 0  ;;  %s839_s9 = smov 0   ;;  %s841_s10 = smov 0  }
   0x2   :  { %s843_s11 = smov 0   ;;  %s845_s12 = smov 0  }
   0x3 LB: > { %s860_s13 = sadd.s32 4294967295, %s820_s12   ;;  %s654_s14 = sadd.s32 4294967294, %s820_s12   ;;  %s820_s12 = sphi %s845_s12, %s1138_s12   ;;  %s816_s11 = sphi %s843_s11, %s1137_s11   ;;  %s812_s10 = sphi %s841_s10, %s1136_s10   ;;  %s808_s9 = sphi %s839_s9, %s1135_s9  }
   0x4   : > { %s864_s15 = sadd.s32 1, %s820_s12   ;;  %s74_s16 = sadd.s32 1, %s816_s11 }
   0x5   : > { %s71_s17 = ssub.s32 %s820_s12, %s864_s15  ;;  %p84_p0 = scmp.ne.s32.totalorder %s816_s11, %s812_s10 }
   0x6   : > { %p72_p1 = scmp.eq.s32.totalorder %s71_s17, 0  ;;  %p85_p2 = scmp.eq.s32.totalorder %s860_s13, 3 }
   0x7   : > { %p90_p3 = scmp.ne.s32.totalorder %s812_s10, %s808_s9  ;;  %p91_p4 = scmp.eq.s32.totalorder %s654_s14, 3 }
   0x8   : > { %s875_s18 = scalar_select %p72_p1, %s816_s11, %s74_s16  }
   0x9   : > { %p877_p5 = por %p85_p2, %p84_p0  ;;  %p881_p6 = por %p91_p4, %p90_p3 }
   0xa   : > { %p657_p7 = scmp.ge.s32.totalorder %s820_s12, 1  ;;  %p143_p8 = scmp.lt.s32.totalorder %s820_s12, 5 }
   0xc   : > { %p144_p9 = pnand %p657_p7, %p143_p8 }
   0xd   : > { %s658_s21 = sshll.u32 (!%p144_p9), %s860_s13, 3  ;;  %v822_v0 = vmov (!%p144_p9), 0   ;;  %vm221_vm0 = vcmask (!%p144_p9), 261120   ;;  %v318_v37 = vlaneseq (!%p144_p9)  ;;  %s662_s29 = sshll.u32 (!%p144_p9), %s860_s13, 6  ;;  %vm547_vm11 = vcmask (!%p144_p9), 7168  }
   0xe   : > { %147 = sbr.rel (%p144_p9) target bundleno = 626 (0x272), region = 28  ;;  %p182_p10 = scmp.lt.s32.totalorder (!%p144_p9), %s658_s21, 24  ;;  %709 = vset.pattern.permute.xlu1 (!%p144_p9), %v822_v0  ;;  %708 = vset.pattern.permute.xlu0 (!%p144_p9), %v822_v0 }
   0xf   : > { %v960_v44 = vand.u32 (!%p144_p9), 127, %v318_v37  ;;  %s175_s30 = sand.u32 (!%p144_p9), 1, %s812_s10   ;;  %s663_s5 = sshll.u32 (!%p144_p9), %s860_s13, 4 }
  0x10   : > { %s176_s3 = scalar_lea.vmem (!%p144_p9), [#allocation2], %s175_s30  ;;  %s1090_s14 = scalar_lea.hbm (!%p144_p9), %s1132_s2, %s663_s5 }
  0x11   : > { %s587_s4 = sshll.u32 (!%p144_p9), %s176_s3, 4  ;;  %s575_s16 = scalar_lea.sflag (!%p144_p9), [#allocation3], %s175_s30  ;;  %s1085_s4 = int_to_ptr.vmem [resolvable:$true] %s587_s4 }
  0x12   : > { %s758_s17 = scalar_lea.vmem (!%p144_p9), %s1085_s4, 16  ;;  %s823_s13 = smov (!%p144_p9), [#allocation2]  }
  0x13   : > { %p759_p11 = scmp.ne.s32.totalorder (!%p144_p9), %s1085_s4, %s758_s17 }
  0x15   : > { %s1140_s21 = smov (!%p182_p10, %s658_s21), 24  ;;  %p760_p12 = pnand %p759_p11, %p877_p5 }
  0x16   : > { %s659_s22 = sshll.u32 %s1140_s21, 3  ;;  %s762_s21 = sshll.u32 %s823_s13, 4  ;;  %s763_s21 = int_to_ptr.vmem [resolvable:$false] %s762_s21 }
  0x17   : > { %s185_s25 = scalar_lea.vmem %s1130_s0, %s659_s22  ;;  %s199_s28 = scalar_lea.vmem %s1131_s1, %s659_s22 }
  0x18   : > { %v894_v1 = vld [vmem:[%s185_s25 + $0x10] sm:$0xff]  ;;  %v896_v2 = vld [vmem:[%s185_s25] sm:$0xff]  ;;  %v898_v3 = vld [vmem:[%s185_s25 + $0x18] sm:$0xff]  ;;  %p761_p13 = pneg %p760_p12  ;;  %s764_s22 = scalar_lea.vmem %s763_s21, 32 }
  0x19   : > { %v228_v4 = vsel %vm221_vm0, %v894_v1, -inf  ;;  %v222_v5 = vsel %vm221_vm0, %v896_v2, -inf  ;;  %v904_v6 = vld [vmem:[%s185_s25 + $0x8] sm:$0xff]  ;;  %v231_v7 = vsel %vm221_vm0, %v898_v3, -inf  ;;  %v912_v10 = vld [vmem:[%s185_s25 + $0x20] sm:$0xff]  ;;  %v918_v13 = vld [vmem:[%s185_s25 + $0x38] sm:$0xff]  ;;  %p765_p0 = scmp.lt.s32.totalorder %s1085_s4, %s763_s21  ;;  %p766_p1 = scmp.lt.s32.totalorder %s764_s22, %s758_s17 }
  0x1a   : > { %229 = vmax.xlane.f32.xlu1 %v228_v4  ;;  %223 = vmax.xlane.f32.xlu0 %v222_v5  ;;  %v225_v8 = vsel %vm221_vm0, %v904_v6, -inf  ;;  %v910_v9 = vld [vmem:[%s185_s25 + $0x28] sm:$0xff]  ;;  %v234_v12 = vsel %vm221_vm0, %v912_v10, -inf  ;;  %v920_v14 = vld [vmem:[%s185_s25 + $0x30] sm:$0xff]  ;;  %v243_v15 = vsel %vm221_vm0, %v918_v13, -inf  ;;  %v213_v19 = vld [vmem:[%s199_s28] sm:$0xff] }
  0x1b   : > { %v237_v11 = vsel %vm221_vm0, %v910_v9, -inf  ;;  %v240_v16 = vsel %vm221_vm0, %v920_v14, -inf  ;;  %v214_v17 = vld [vmem:[%s199_s28 + $0x8] sm:$0xff]  ;;  %v215_v18 = vld [vmem:[%s199_s28 + $0x10] sm:$0xff]  ;;  %v216_v20 = vld [vmem:[%s199_s28 + $0x18] sm:$0xff]  ;;  %v384_v25 = vsel %vm221_vm0, %v896_v2, 0.0  ;;  %p767_p2 = por %p766_p1, %p765_p0 }
  0x1c   : > { %v217_v21 = vld [vmem:[%s199_s28 + $0x20] sm:$0xff]  ;;  %v218_v22 = vld [vmem:[%s199_s28 + $0x28] sm:$0xff]  ;;  %v219_v23 = vld [vmem:[%s199_s28 + $0x30] sm:$0xff]  ;;  %v387_v26 = vsel %vm221_vm0, %v904_v6, 0.0  ;;  %v390_v27 = vsel %vm221_vm0, %v894_v1, 0.0 }
  0x1d   : > { %v220_v24 = vld [vmem:[%s199_s28 + $0x38] sm:$0xff]  ;;  %p768_p3 = pnand %p767_p2, %p761_p13 }
  0x1e   : > { %232 = vmax.xlane.f32.xlu1 %v231_v7  ;;  %226 = vmax.xlane.f32.xlu0 %v225_v8 }
  0x22   : > { %238 = vmax.xlane.f32.xlu1 %v237_v11  ;;  %235 = vmax.xlane.f32.xlu0 %v234_v12 }
  0x26   : > { %244 = vmax.xlane.f32.xlu1 %v243_v15  ;;  %241 = vmax.xlane.f32.xlu0 %v240_v16 }
  0x37   : > { %324 = vperm.xlu1 %709, %v214_v17  }
  0x3b   : > { %327 = vperm.xlu1 %709, %v215_v18  }
  0x3c   : > { %321 = vperm.xlu0 %708, %v213_v19   ;;  %v393_v19 = vsel %vm221_vm0, %v898_v3, 0.0 }
  0x3f   : > { %330 = vperm.xlu1 %709, %v216_v20  }
  0x43   : > { %333 = vperm.xlu1 %709, %v217_v21  }
  0x47   : > { %336 = vperm.xlu1 %709, %v218_v22   ;;  %v396_v22 = vsel %vm221_vm0, %v912_v10, 0.0 }
  0x4b   : > { %339 = vperm.xlu1 %709, %v219_v23  }
  0x4f   : > { %342 = vperm.xlu1 %709, %v220_v24  }
  0x5b   : > { %385 = vadd.xlane.f32.xlu0 %v384_v25 }
  0x73   : > { %388 = vadd.xlane.f32.xlu1 %v387_v26  ;;  %v399_v26 = vsel %vm221_vm0, %v910_v9, 0.0 }
  0x77   : > { %391 = vadd.xlane.f32.xlu1 %v390_v27 }
  0xa7   : > { %v935_v28 = vpop.xlane.xlu1 %229  ;;  %v937_v29 = vpop.xlane.xlu0 %223 }
  0xa8   : > { %v246_v30 = vsub.f32 %v896_v2, %v937_v29  ;;  %v248_v42 = vsub.f32 %v894_v1, %v935_v28 }
  0xaa   : > { %v254_v33 = vmul.f32 1.442695, %v246_v30  ;;  %v258_v49 = vmul.f32 1.442695, %v248_v42 }
  0xab   : > { %v941_v31 = vpop.xlane.xlu1 %232  ;;  %v943_v32 = vpop.xlane.xlu0 %226 }
  0xac   : > { %v249_v34 = vsub.f32 %v898_v3, %v941_v31  ;;  %v247_v36 = vsub.f32 %v904_v6, %v943_v32  ;;  %710 = vpow2.f32 %v254_v33 }
  0xae   : > { %v260_v38 = vmul.f32 1.442695, %v249_v34  ;;  %v256_v43 = vmul.f32 1.442695, %v247_v36  ;;  %v402_v34 = vsel %vm221_vm0, %v920_v14, 0.0 }
  0xaf   : > { %v947_v35 = vpop.xlane.xlu1 %238  ;;  %v953_v40 = vpop.xlane.xlu0 %235 }
  0xb0   : > { %v251_v39 = vsub.f32 %v910_v9, %v947_v35  ;;  %712 = vpow2.f32 %v260_v38  ;;  %v250_v50 = vsub.f32 %v912_v10, %v953_v40  ;;  %v405_v38 = vsel %vm221_vm0, %v918_v13, 0.0 }
  0xb1   : > { %714 = vpow2.f32 %v256_v43 }
  0xb2   : > { %v264_v45 = vmul.f32 1.442695, %v251_v39  ;;  %v262_v57 = vmul.f32 1.442695, %v250_v50 }
  0xb3   : > { %v955_v41 = vpop.xlane.xlu1 %244  ;;  %v964_v47 = vpop.xlane.xlu0 %241 }
  0xb4   : > { %v253_v46 = vsub.f32 %v918_v13, %v955_v41  ;;  %716 = vpow2.f32 %v264_v45  ;;  %v252_v58 = vsub.f32 %v920_v14, %v964_v47 }
  0xb5   : > { %718 = vpow2.f32 %v258_v49 }
  0xb6   : > { %v268_v51 = vmul.f32 1.442695, %v253_v46  ;;  %v711_v54 = vpop.eup %710  ;;  %v266_v0 = vmul.f32 1.442695, %v252_v58 }
  0xb7   : > { %v325_v48 = vpop.permute.xlu1 %324  ;;  %v270_v60 = vsel %vm221_vm0, %v711_v54, 0.0 }
  0xb8   : > { %vm345_vm1 = vcmp.eq.s32.totalorder %v960_v44, %v325_v48  ;;  %720 = vpow2.f32 %v268_v51 }
  0xb9   : > { %v353_v52 = vsel %vm345_vm1, %v904_v6, 0.0  ;;  %722 = vpow2.f32 %v262_v57 }
  0xba   : > { %v363_v53 = vsel %vm221_vm0, %v353_v52, 0.0  ;;  %v713_v62 = vpop.eup %712  ;;  %724 = vpow2.f32 %v266_v0 }
  0xbb   : > { %v328_v55 = vpop.permute.xlu1 %327  ;;  %364 = vadd.xlane.f32.xlu1 %v363_v53  ;;  %v322_v56 = vpop.permute.xlu0 %321  ;;  %v279_v5 = vsel %vm221_vm0, %v713_v62, 0.0 }
  0xbc   : > { %vm346_vm2 = vcmp.eq.s32.totalorder %v960_v44, %v328_v55  ;;  %vm344_vm3 = vcmp.eq.s32.totalorder %v960_v44, %v322_v56  ;;  %v715_v4 = vpop.eup %714 }
  0xbd   : > { %v352_v59 = vsel %vm344_vm3, %v896_v2, 0.0  ;;  %v354_v63 = vsel %vm346_vm2, %v894_v1, 0.0  ;;  %v273_v12 = vsel %vm221_vm0, %v715_v4, 0.0 }
  0xbe   : > { %v360_v61 = vsel %vm221_vm0, %v352_v59, 0.0  ;;  %v366_v6 = vsel %vm221_vm0, %v354_v63, 0.0  ;;  %v717_v7 = vpop.eup %716 }
  0xbf   : > { %271 = vadd.xlane.f32.xlu1 %v270_v60  ;;  %361 = vadd.xlane.f32.xlu0 %v360_v61  ;;  %v331_v2 = vpop.permute.xlu1 %330  ;;  %v719_v8 = vpop.eup %718  ;;  %v285_v11 = vsel %vm221_vm0, %v717_v7, 0.0 }
  0xc0   : > { %v276_v16 = vsel %vm221_vm0, %v719_v8, 0.0  ;;  %vm347_vm4 = vcmp.eq.s32.totalorder %v960_v44, %v331_v2 }
  0xc1   : > { %v355_v25 = vsel %vm347_vm4, %v898_v3, 0.0 }
  0xc2   : > { %v721_v15 = vpop.eup %720  ;;  %v369_v27 = vsel %vm221_vm0, %v355_v25, 0.0 }
  0xc3   : > { %280 = vadd.xlane.f32.xlu1 %v279_v5  ;;  %367 = vadd.xlane.f32.xlu0 %v366_v6  ;;  %v291_v1 = vsel %vm221_vm0, %v721_v15, 0.0  ;;  %v723_v17 = vpop.eup %722  ;;  %v334_v18 = vpop.permute.xlu1 %333 }
  0xc4   : > { %v282_v20 = vsel %vm221_vm0, %v723_v17, 0.0  ;;  %v725_v21 = vpop.eup %724  ;;  %vm348_vm5 = vcmp.eq.s32.totalorder %v960_v44, %v334_v18 }
  0xc5   : > { %v288_v24 = vsel %vm221_vm0, %v725_v21, 0.0  ;;  %v356_v33 = vsel %vm348_vm5, %v912_v10, 0.0 }
  0xc6   : > { %v372_v36 = vsel %vm221_vm0, %v356_v33, 0.0 }
  0xc7   : > { %286 = vadd.xlane.f32.xlu1 %v285_v11  ;;  %274 = vadd.xlane.f32.xlu0 %v273_v12  ;;  %v337_v23 = vpop.permute.xlu1 %336 }
  0xc8   : > { %vm349_vm6 = vcmp.eq.s32.totalorder %v960_v44, %v337_v23 }
  0xc9   : > { %v357_v3 = vsel %vm349_vm6, %v910_v9, 0.0 }
  0xca   : > { %v375_v42 = vsel %vm221_vm0, %v357_v3, 0.0 }
  0xcb   : > { %292 = vadd.xlane.f32.xlu1 %v291_v1  ;;  %277 = vadd.xlane.f32.xlu0 %v276_v16  ;;  %v340_v30 = vpop.permute.xlu1 %339 }
  0xcc   : > { %vm350_vm7 = vcmp.eq.s32.totalorder %v960_v44, %v340_v30 }
  0xcd   : > { %v358_v10 = vsel %vm350_vm7, %v920_v14, 0.0 }
  0xce   : > { %v378_v43 = vsel %vm221_vm0, %v358_v10, 0.0 }
  0xcf   : > { %394 = vadd.xlane.f32.xlu1 %v393_v19  ;;  %283 = vadd.xlane.f32.xlu0 %v282_v20  ;;  %v343_v39 = vpop.permute.xlu1 %342 }
  0xd0   : > { %vm351_vm8 = vcmp.eq.s32.totalorder %v960_v44, %v343_v39 }
  0xd1   : > { %v359_v45 = vsel %vm351_vm8, %v918_v13, 0.0 }
  0xd2   : > { %v381_v9 = vsel %vm221_vm0, %v359_v45, 0.0 }
  0xd3   : > { %397 = vadd.xlane.f32.xlu1 %v396_v22  ;;  %289 = vadd.xlane.f32.xlu0 %v288_v24 }
  0xd7   : > { %400 = vadd.xlane.f32.xlu1 %v399_v26  ;;  %370 = vadd.xlane.f32.xlu0 %v369_v27 }
  0xdb   : > { %403 = vadd.xlane.f32.xlu1 %v402_v34  ;;  %373 = vadd.xlane.f32.xlu0 %v372_v36 }
  0xdf   : > { %406 = vadd.xlane.f32.xlu1 %v405_v38  ;;  %376 = vadd.xlane.f32.xlu0 %v375_v42 }
  0xe3   : > { %379 = vadd.xlane.f32.xlu0 %v378_v43 }
  0xe7   : > { %382 = vadd.xlane.f32.xlu0 %v381_v9 }
  0xe8   : > { %v386_v49 = vpop.xlane.xlu0 %385 }
 0x100   : > { %v1012_v46 = vpop.xlane.xlu1 %388 }
 0x104   : > { %v1014_v48 = vpop.xlane.xlu1 %391 }
 0x148   : > { %v365_v50 = vpop.xlane.xlu1 %364 }
 0x14c   : > { %v272_v51 = vpop.xlane.xlu1 %271  ;;  %v362_v52 = vpop.xlane.xlu0 %361 }
 0x14d   : > { %726 = vlog2.f32 %v272_v51 }
 0x150   : > { %v281_v14 = vpop.xlane.xlu1 %280  ;;  %v1016_v53 = vpop.xlane.xlu0 %367 }
 0x151   : > { %728 = vlog2.f32 %v281_v14 }
 0x154   : > { %v287_v44 = vpop.xlane.xlu1 %286  ;;  %v275_v54 = vpop.xlane.xlu0 %274 }
 0x155   : > { %730 = vlog2.f32 %v287_v44 }
 0x156   : > { %732 = vlog2.f32 %v275_v54 }
 0x157   : > { %v727_v13 = vpop.eup %726 }
 0x158   : > { %v295_v55 = vmul.f32 0.6931472, %v727_v13  ;;  %v293_v56 = vpop.xlane.xlu1 %292  ;;  %v278_v57 = vpop.xlane.xlu0 %277 }
 0x159   : > { %734 = vlog2.f32 %v278_v57 }
 0x15a   : > { %v310_v58 = vadd.f32 %v295_v55, %v937_v29  ;;  %736 = vlog2.f32 %v293_v56 }
 0x15b   : > { %v729_v59 = vpop.eup %728 }
 0x15c   : > { %v424_v60 = vmul.f32 32.0, %v310_v58  ;;  %v408_v61 = vsub.f32 %v310_v58, %v362_v52  ;;  %v301_v62 = vmul.f32 0.6931472, %v729_v59  ;;  %v395_v63 = vpop.xlane.xlu1 %394  ;;  %v284_v0 = vpop.xlane.xlu0 %283 }
 0x15d   : > { %738 = vlog2.f32 %v284_v0 }
 0x15e   : > { %v432_v4 = vsub.f32 %v424_v60, %v386_v49  ;;  %v313_v5 = vadd.f32 %v301_v62, %v941_v31  ;;  %v416_v7 = vmul.f32 0.9, %v408_v61 }
 0x15f   : > { %v731_v6 = vpop.eup %730 }
 0x160   : > { %v733_v2 = vpop.eup %732  ;;  %v440_v8 = vmul.f32 0.003125, %v432_v4  ;;  %v305_v11 = vmul.f32 0.6931472, %v731_v6  ;;  %v427_v12 = vmul.f32 32.0, %v313_v5  ;;  %v398_v15 = vpop.xlane.xlu1 %397 }
 0x161   : > { %v290_v29 = vpop.xlane.xlu0 %289  ;;  %v297_v1 = vmul.f32 0.6931472, %v733_v2 }
 0x162   : > { %740 = vlog2.f32 %v290_v29  ;;  %v1020_v16 = vadd.f32 %v440_v8, %v416_v7  ;;  %v315_v17 = vadd.f32 %v305_v11, %v947_v35  ;;  %v435_v19 = vsub.f32 %v427_v12, %v395_v63 }
 0x163   : > { %v311_v18 = vadd.f32 %v297_v1, %v943_v32  ;;  %v735_v20 = vpop.eup %734 }
 0x164   : > { %v456_v31 = vsub.f32 0.0, %v1020_v16  ;;  %v401_v21 = vpop.xlane.xlu1 %400  ;;  %v737_v23 = vpop.eup %736  ;;  %v299_v26 = vmul.f32 0.6931472, %v735_v20  ;;  %v429_v33 = vmul.f32 32.0, %v315_v17  ;;  %v443_v3 = vmul.f32 0.003125, %v435_v19 }
 0x165   : > { %v371_v22 = vpop.xlane.xlu0 %370  ;;  %v409_v24 = vsub.f32 %v311_v18, %v365_v50  ;;  %v425_v25 = vmul.f32 32.0, %v311_v18  ;;  %v309_v39 = vmul.f32 0.6931472, %v737_v23 }
 0x166   : > { %v411_v27 = vsub.f32 %v313_v5, %v371_v22  ;;  %v464_v30 = vmul.f32 1.442695, %v456_v31  ;;  %v312_v35 = vadd.f32 %v299_v26, %v935_v28  ;;  %v437_v51 = vsub.f32 %v429_v33, %v401_v21 }
 0x167   : > { %v739_v34 = vpop.eup %738  ;;  %v433_v36 = vsub.f32 %v425_v25, %v1012_v46  ;;  %v417_v38 = vmul.f32 0.9, %v409_v24 }
 0x168   : > { %v419_v32 = vmul.f32 0.9, %v411_v27  ;;  %742 = vpow2.f32 %v464_v30  ;;  %v303_v42 = vmul.f32 0.6931472, %v739_v34  ;;  %v410_v45 = vsub.f32 %v312_v35, %v1016_v53  ;;  %v404_v52 = vpop.xlane.xlu1 %403 }
 0x169   : > { %v374_v10 = vpop.xlane.xlu0 %373  ;;  %v441_v43 = vmul.f32 0.003125, %v433_v36  ;;  %v426_v9 = vmul.f32 32.0, %v312_v35  ;;  %v445_v61 = vmul.f32 0.003125, %v437_v51  ;;  %v514_v30 = vshrl.u32 %v318_v37, 7 }
 0x16a   : > { %v1028_v49 = vadd.f32 %v443_v3, %v419_v32  ;;  %v314_v50 = vadd.f32 %v303_v42, %v953_v40  ;;  %v418_v54 = vmul.f32 0.9, %v410_v45  ;;  %v317_v40 = vadd.f32 %v309_v39, %v955_v41 }
 0x16b   : > { %v1031_v14 = vadd.f32 %v441_v43, %v417_v38  ;;  %v434_v28 = vsub.f32 %v426_v9, %v1014_v48  ;;  %v1052_v32 = vstv %s662_s29  ;;  %v515_v38 = vadd.s32 8, %v514_v30 }
 0x16c   : > { %v741_v46 = vpop.eup %740  ;;  %v459_v44 = vsub.f32 0.0, %v1028_v49  ;;  %v428_v13 = vmul.f32 32.0, %v314_v50  ;;  %v412_v56 = vsub.f32 %v314_v50, %v374_v10  ;;  %v407_v7 = vpop.xlane.xlu1 %406  ;;  %v431_v12 = vmul.f32 32.0, %v317_v40 }
 0x16d   : > { %v307_v55 = vmul.f32 0.6931472, %v741_v46  ;;  %v377_v57 = vpop.xlane.xlu0 %376  ;;  %v457_v53 = vsub.f32 0.0, %v1031_v14  ;;  %v442_v58 = vmul.f32 0.003125, %v434_v28  ;;  %v517_v9 = vadd.s32 24, %v514_v30 }
 0x16e   : > { %v470_v59 = vmul.f32 1.442695, %v459_v44  ;;  %v436_v60 = vsub.f32 %v428_v13, %v398_v15  ;;  %v413_v63 = vsub.f32 %v315_v17, %v377_v57  ;;  %v420_v4 = vmul.f32 0.9, %v412_v56 }
 0x16f   : > { %v316_v62 = vadd.f32 %v307_v55, %v964_v47  ;;  %v466_v0 = vmul.f32 1.442695, %v457_v53  ;;  %v1038_v48 = vadd.f32 %v442_v58, %v418_v54  ;;  %v439_v19 = vsub.f32 %v431_v12, %v407_v7 }
 0x170   : > { %744 = vpow2.f32 %v470_v59  ;;  %v444_v5 = vmul.f32 0.003125, %v436_v60  ;;  %v421_v2 = vmul.f32 0.9, %v413_v63  ;;  %v523_v50 = vadd.s32 %v1052_v32, %v514_v30 }
 0x171   : > { %v430_v6 = vmul.f32 32.0, %v316_v62  ;;  %v380_v8 = vpop.xlane.xlu0 %379  ;;  %746 = vpow2.f32 %v466_v0  ;;  %v458_v11 = vsub.f32 0.0, %v1038_v48  ;;  %v447_v34 = vmul.f32 0.003125, %v439_v19 }
 0x172   : > { %v414_v41 = vsub.f32 %v316_v62, %v380_v8  ;;  %v743_v15 = vpop.eup %742  ;;  %v1041_v47 = vadd.f32 %v444_v5, %v420_v4  ;;  %v1043_v1 = vadd.f32 %v445_v61, %v421_v2  ;;  %v524_v46 = vadd.s32 %v1052_v32, %v515_v38 }
 0x173   : > { %v438_v29 = vsub.f32 %v430_v6, %v404_v52  ;;  %v480_v17 = vsub.f32 1.0, %v743_v15  ;;  %v468_v18 = vmul.f32 1.442695, %v458_v11  ;;  %v516_v28 = vadd.s32 16, %v514_v30 }
 0x174   : > { %v422_v20 = vmul.f32 0.9, %v414_v41  ;;  %v460_v21 = vsub.f32 0.0, %v1041_v47  ;;  %v461_v22 = vsub.f32 0.0, %v1043_v1  ;;  %v518_v13 = vadd.s32 32, %v514_v30 }
 0x175   : > { %v446_v31 = vmul.f32 0.003125, %v438_v29  ;;  %v383_v23 = vpop.xlane.xlu0 %382  ;;  %748 = vpow2.f32 %v468_v18  ;;  %v488_v33 = vmax.f32 %v480_v17, 0.0  ;;  %v526_v57 = vadd.s32 %v1052_v32, %v517_v9 }
 0x176   : > { %v415_v24 = vsub.f32 %v317_v40, %v383_v23  ;;  %v472_v25 = vmul.f32 1.442695, %v460_v21  ;;  %v474_v26 = vmul.f32 1.442695, %v461_v22  ;;  %vm531_vm9 = vcmp.lt.s32.totalorder %v523_v50, 200 }
 0x177   : > { %v1048_v27 = vadd.f32 %v446_v31, %v422_v20  ;;  %v496_v45 = vmul.f32 %v488_v33, %v488_v33  ;;  %vm532_vm10 = vcmp.lt.s32.totalorder %v524_v46, 200  ;;  %v525_v40 = vadd.s32 %v1052_v32, %v516_v28 }
 0x178   : > { %v423_v36 = vmul.f32 0.9, %v415_v24  ;;  %750 = vpow2.f32 %v472_v25  ;;  %v519_v60 = vadd.s32 40, %v514_v30  ;;  %v527_v0 = vadd.s32 %v1052_v32, %v518_v13 }
 0x179   : > { %v462_v35 = vsub.f32 0.0, %v1048_v27  ;;  %752 = vpow2.f32 %v474_v26  ;;  %v504_v56 = vmul.f32 %v496_v45, %v1020_v16  ;;  %v520_v4 = vadd.s32 48, %v514_v30 }
 0x17a   : > { %v745_v3 = vpop.eup %744  ;;  %v1054_v39 = vadd.f32 %v447_v34, %v423_v36  ;;  %vm534_vm12 = vcmp.lt.s32.totalorder %v526_v57, 200  ;;  %vm533_vm13 = vcmp.lt.s32.totalorder %v525_v40, 200  ;;  %vm535_vm14 = vcmp.lt.s32.totalorder %v527_v0, 200 }
 0x17b   : > { %v483_v42 = vsub.f32 1.0, %v745_v3  ;;  %v476_v10 = vmul.f32 1.442695, %v462_v35  ;;  %v747_v43 = vpop.eup %746  ;;  %v539_v16 = vsel %vm531_vm9, %v504_v56, 0.0  ;;  %v529_v18 = vadd.s32 %v1052_v32, %v520_v4 }
 0x17c   : > { %v463_v37 = vsub.f32 0.0, %v1054_v39  ;;  %v481_v51 = vsub.f32 1.0, %v747_v43  ;;  %v548_v19 = vsel %vm547_vm11, %v539_v16, 0.0  ;;  %v521_v21 = vadd.s32 56, %v514_v30 }
 0x17d   : > { %v491_v52 = vmax.f32 %v483_v42, 0.0  ;;  %754 = vpow2.f32 %v476_v10  ;;  %vm537_vm0 = vcmp.lt.s32.totalorder %v529_v18, 200 }
 0x17e   : > { %v478_v44 = vmul.f32 1.442695, %v463_v37  ;;  %v489_v54 = vmax.f32 %v481_v51, 0.0  ;;  %v530_v42 = vadd.s32 %v1052_v32, %v521_v21 }
 0x17f   : > { %v749_v55 = vpop.eup %748  ;;  %v499_v59 = vmul.f32 %v491_v52, %v491_v52 }
 0x180   : > { %756 = vpow2.f32 %v478_v44  ;;  %v497_v53 = vmul.f32 %v489_v54, %v489_v54  ;;  %v482_v58 = vsub.f32 1.0, %v749_v55  ;;  %vm538_vm1 = vcmp.lt.s32.totalorder %v530_v42, 200 }
 0x181   : > { %v507_v8 = vmul.f32 %v499_v59, %v1028_v49 }
 0x182   : > { %v751_v61 = vpop.eup %750  ;;  %v505_v62 = vmul.f32 %v497_v53, %v1031_v14  ;;  %v490_v63 = vmax.f32 %v482_v58, 0.0  ;;  %v528_v14 = vadd.s32 %v1052_v32, %v519_v60 }
 0x183   : > { %v753_v5 = vpop.eup %752  ;;  %v484_v6 = vsub.f32 1.0, %v751_v61  ;;  %v542_v23 = vsel %vm534_vm12, %v507_v8, 0.0 }
 0x184   : > { %v540_v7 = vsel %vm532_vm10, %v505_v62, 0.0  ;;  %v498_v2 = vmul.f32 %v490_v63, %v490_v63  ;;  %v485_v11 = vsub.f32 1.0, %v753_v5  ;;  %vm536_vm15 = vcmp.lt.s32.totalorder %v528_v14, 200 }
 0x185   : > { %v549_v12 = vsel %vm547_vm11, %v540_v7, 0.0  ;;  %v492_v41 = vmax.f32 %v484_v6, 0.0  ;;  %v553_v3 = vsel %vm547_vm11, %v542_v23, 0.0 }
 0x186   : > { %v506_v29 = vmul.f32 %v498_v2, %v1038_v48  ;;  %v493_v17 = vmax.f32 %v485_v11, 0.0  ;;  %v550_v22 = vadd.f32 %v549_v12, %v548_v19 }
 0x187   : > { %v755_v15 = vpop.eup %754  ;;  %v500_v20 = vmul.f32 %v492_v41, %v492_v41 }
 0x188   : > { %v486_v31 = vsub.f32 1.0, %v755_v15  ;;  %v541_v49 = vsel %vm533_vm13, %v506_v29, 0.0  ;;  %v501_v24 = vmul.f32 %v493_v17, %v493_v17 }
 0x189   : > { %v551_v26 = vsel %vm547_vm11, %v541_v49, 0.0  ;;  %v508_v33 = vmul.f32 %v500_v20, %v1041_v47 }
 0x18a   : > { %v757_v25 = vpop.eup %756  ;;  %v494_v48 = vmax.f32 %v486_v31, 0.0  ;;  %v552_v34 = vadd.f32 %v551_v26, %v550_v22  ;;  %v509_v36 = vmul.f32 %v501_v24, %v1043_v1 }
 0x18b   : > { %v487_v35 = vsub.f32 1.0, %v757_v25  ;;  %v543_v30 = vsel %vm535_vm14, %v508_v33, 0.0 }
 0x18c   : > { %v502_v38 = vmul.f32 %v494_v48, %v494_v48  ;;  %v554_v10 = vadd.f32 %v553_v3, %v552_v34  ;;  %v555_v43 = vsel %vm547_vm11, %v543_v30, 0.0  ;;  %v544_v45 = vsel %vm536_vm15, %v509_v36, 0.0 }
 0x18d   : > { %v495_v9 = vmax.f32 %v487_v35, 0.0  ;;  %v557_v51 = vsel %vm547_vm11, %v544_v45, 0.0 }
 0x18e   : > { %v510_v47 = vmul.f32 %v502_v38, %v1048_v27  ;;  %v556_v50 = vadd.f32 %v555_v43, %v554_v10 }
 0x18f   : > { %v503_v37 = vmul.f32 %v495_v9, %v495_v9 }
 0x190   : > { %v545_v1 = vsel %vm537_vm0, %v510_v47, 0.0  ;;  %v558_v46 = vadd.f32 %v557_v51, %v556_v50 }
 0x191   : > { %v511_v52 = vmul.f32 %v503_v37, %v1054_v39  ;;  %v559_v28 = vsel %vm547_vm11, %v545_v1, 0.0 }
 0x192   : > { %v560_v44 = vadd.f32 %v559_v28, %v558_v46 }
 0x193   : > { %v546_v32 = vsel %vm538_vm1, %v511_v52, 0.0 }
 0x194   : > { %v561_v54 = vsel %vm547_vm11, %v546_v32, 0.0 }
 0x195   : > { %v562_v13 = vadd.f32 %v561_v54, %v560_v44 }
 0x197   : > { %563 = vadd.xlane.f32.xlu0 %v562_v13 }
 0x224   : > { %v564_v27 = vpop.xlane.xlu0 %563 }
 0x225   : > { %v565_v55 = vrot.slane %v564_v27, 4 }
 0x227   : > { %v566_v56 = vadd.f32 %v565_v55, %v564_v27 }
 0x229   : > { %v567_v57 = vrot.slane %v566_v56, 2 }
 0x22b   : > { %v568_v53 = vadd.f32 %v567_v57, %v566_v56 }
 0x22d   : > { %v569_v58 = vrot.slane %v568_v53, 1 }
 0x22f   : > { %v570_v59 = vadd.f32 %v569_v58, %v568_v53 }
 0x231   : > { %666 = vpush %v570_v59 }
 0x262   : > { %s667_s6 = spop %666 }
 0x263   : > { %v572_v39 = vstv %s667_s6 }
 0x264   : > { %573 = vst [vmem:[%s176_s3] sm:$0x1] %v572_v39 }
 0x265   : > { %771 = shalt.err (!%p768_p3)
}
 0x266   : > { %s772_s23 = scalar_lea.hbm %s1090_s14, 16  ;;  %s776_s26 = scalar_lea.hbm %s1132_s2, 64 }
 0x267   : > { %p773_p4 = scmp.ne.s32.totalorder %s1090_s14, %s772_s23  ;;  %p777_p9 = scmp.lt.u32.totalorder %s1090_s14, %s1132_s2 }
 0x268   : > { %p778_p10 = scmp.lt.u32.totalorder %s776_s26, %s772_s23  ;;  %p780_p12 = scmp.lt.u32.totalorder %s772_s23, %s1090_s14 }
 0x269   : > { %p774_p7 = pnand %p773_p4, %p877_p5 }
 0x26a   : > { %p779_p11 = por %p778_p10, %p777_p9 }
 0x26b   : > { %p775_p8 = pneg %p774_p7 }
 0x26c   : > { %p781_p13 = por %p780_p12, %p779_p11 }
 0x26e   : > { %p782_p0 = pnand %p781_p13, %p775_p8 }
 0x270   : > { %785 = shalt.err (!%p782_p0)
}
 0x271   : > { %668 = dma.vmem_to_hbm [thread:$0]  (%p877_p5), %s1085_s4, 16, %s1090_s14, %s575_s16  }
 0x272 PF: > { %p674_p1 = scmp.ge.s32.totalorder %s820_s12, 2  ;;  %s599_s29 = sand.u32 1, %s808_s9  }
 0x273   : > { %s600_s30 = scalar_lea.sflag [#allocation3], %s599_s29 }
 0x274   : > { %p671_p2 = pnand %p674_p1, %p881_p6 }
 0x276   : > { %803 = dma.done.wait (!%p671_p2), %s600_s30, 16  }
 0x277   : > { %805 = vsyncadd (!%p671_p2), %s600_s30, 4294967280  ;;  %p12_p3 = scmp.ge.s32.totalorder %s864_s15, 6   ;;  %s1135_s9 = smov %s812_s10 }
 0x278   : > { %s1136_s10 = smov %s816_s11  ;;  %s1137_s11 = smov %s875_s18 }
 0x279   : > { %s1138_s12 = smov %s864_s15  ;;  %14 = sbr.rel (!%p12_p3) target bundleno = 3 (0x3), region = 66 }
 0x280   :  { %604 = vsyncpa [#allocation3], 1 }
 0x281   :  { %606 = vsyncpa [#allocation3 + $0x1], 1 }

</bundles_post_ra>
